<compile_context>
chip_gen: v7x
topology: tpu7x:2x2x1
jax: 0.10.0
libtpu: 0.0.40
codegen_flags: <defaults>
</compile_context>

<pallas_src>
import functools

import jax
import jax.numpy as jnp
from jax.experimental import pallas as pl
from jax.experimental.pallas import tpu as pltpu


def _rotl(v, k):
    """Cyclic left shift along lanes: out[..., i] = v[..., (i + k) % W]."""
    w = v.shape[-1]
    k = k % w
    if k == 0:
        return v
    # pltpu.roll follows jnp.roll semantics; rolling by (w - k) == rolling by
    # -k, i.e. it brings lane i+k to lane i (positive shift only, to be safe).
    return pltpu.roll(v, w - k, axis=1)


def _compact_even_lanes(v, w_out):
    """Pack even lanes: returns u with u[:, j] = v[:, 2*j] for j < w_out.

    log2(w_out) stages; at stage k every element whose remaining leftward
    move still needs bit k set is shifted left by 2**k.  Live elements never
    collide and never wrap, so dead lanes may hold anything.
    """
    w = v.shape[-1]
    lane = jax.lax.broadcasted_iota(jnp.int32, (1, w), 1)  # cheap (1, W) mask math
    k = 0
    while (1 << k) < w_out:
        s = 1 << k
        # Destination lane d takes from lane d+s iff bit (k+1) of (d+s) is set.
        take = ((lane + s) >> (k + 1)) & 1
        v = jnp.where(take == 1, _rotl(v, s), v)
        k += 1
    return v[:, :w_out]


def _gated_pool_kernel(w_img, wo, mask_ref, x_ref, o_ref):
    # SMEM scalar reads first (hoisted above all vector work).
    m00 = mask_ref[0]
    m01 = mask_ref[1]
    m10 = mask_ref[2]
    m11 = mask_ref[3]

    # Block row r = [image row 2t (w_img lanes) | image row 2t+1 (w_img lanes)].
    top = x_ref[:, :w_img].astype(jnp.float32)
    bot = x_ref[:, w_img:].astype(jnp.float32)
    # Bring lane i+1 next to lane i: at even lanes 2j these are window cols
    # (2j, 2j+1).  Odd lanes carry wrapped-but-finite data and are discarded
    # by the compaction below.
    top_r = _rotl(top, 1)
    bot_r = _rotl(bot, 1)

    avg = ((top + top_r) + (bot + bot_r)) * 0.25

    # 2x2 conv as 4 scalar-broadcast FMAs on the VPU (MXU would be wasted).
    conv = m00 * top + m01 * top_r + m10 * bot + m11 * bot_r
    z = jax.nn.sigmoid(conv)

    mx = jnp.maximum(jnp.maximum(top, top_r), jnp.maximum(bot, bot_r))

    full = avg + z * (mx - avg)  # == z*mx + (1-z)*avg, one fewer multiply
    o_ref[...] = _compact_even_lanes(full, wo).astype(o_ref.dtype)


def _pick_rows_per_block(n_rows, row_bytes, target_bytes=2 * 1024 * 1024,
                         min_blocks=8):
    """Largest divisor of n_rows (preferring multiples of 8) under a ~2 MiB
    block budget, while keeping several grid steps for megacore sharding."""
    cap = max(1, target_bytes // max(row_bytes, 1))
    if n_rows >= min_blocks * 8:
        cap = min(cap, max(8, n_rows // min_blocks))
    cap = max(1, min(cap, n_rows))
    for t in range(cap, 0, -1):
        if n_rows % t == 0 and (t % 8 == 0 or t == n_rows):
            return t
    for t in range(cap, 0, -1):
        if n_rows % t == 0:
            return t
    return n_rows


def gated_pool2d(x, mask):
    """x: (B, C, H, W) NCHW; mask: (1, 1, 2, 2).  Returns (B, C, H//2, W//2)."""
    B, C, H, W = x.shape
    Ho, Wo = H // 2, W // 2
    if (H % 2) or (W % 2):
        # Same as PyTorch kernel=stride=2 pooling: drop trailing odd row/col.
        x = x[:, :, :2 * Ho, :2 * Wo]
    We = 2 * Wo                    # (even) pooled image width
    R = B * C * Ho                 # one kernel row per 2x2-window row

    # Free reshape: row r = [image row 2t | image row 2t+1] of image (b, c).
    x_rows = x.reshape(R, 2 * We)
    m = mask.reshape(4).astype(jnp.float32)

    rows = _pick_rows_per_block(R, row_bytes=2 * We * x.dtype.itemsize)
    grid = (R // rows,)

    kernel = functools.partial(_gated_pool_kernel, We, Wo)

    out = pl.pallas_call(
        kernel,
        out_shape=jax.ShapeDtypeStruct((R, Wo), x.dtype),
        grid_spec=pltpu.PrefetchScalarGridSpec(
            num_scalar_prefetch=1,                       # 4 conv weights -> SMEM
            grid=grid,
            in_specs=[pl.BlockSpec((rows, 2 * We), lambda i, m_ref: (i, 0))],
            out_specs=pl.BlockSpec((rows, Wo), lambda i, m_ref: (i, 0)),
        ),
        compiler_params=pltpu.CompilerParams(
            dimension_semantics=("parallel",),
            # Generous but v7x-safe (64 MiB physical there); blocks are ~2 MiB
            # so the double-buffered footprint stays far below this on v5e/v6e
            # (128 MiB physical) as well.
            vmem_limit_bytes=48 * 1024 * 1024,
        ),
    )(m, x_rows)

    return out.reshape(B, C, Ho, Wo)


def gated_pool2d_ref(x, mask):
    """Pure-JAX reference matching the PyTorch forward (kernel=stride=2)."""
    B, C, H, W = x.shape
    Ho, Wo = H // 2, W // 2
    x = x[:, :, :2 * Ho, :2 * Wo]
    xw = x.reshape(B, C, Ho, 2, Wo, 2)
    z = jax.nn.sigmoid(jnp.einsum('bchpwq,pq->bchw', xw, mask.reshape(2, 2)))
    mx = xw.max(axis=(3, 5))
    avg = xw.mean(axis=(3, 5))
    return z * mx + (1.0 - z) * avg


if __name__ == "__main__":
    key = jax.random.PRNGKey(0)
    kx, km = jax.random.split(key)

    # Small but TPU-representative NCHW shape (lane-aligned W): B=2, C=4,
    # H=16, W=256, pool=2, stride=2.
    x = jax.random.normal(kx, (2, 4, 16, 256), dtype=jnp.float32)
    # nn.init.normal_(mask, mean=0.0, std=1.0), shape (1, 1, 2, 2)
    mask = jax.random.normal(km, (1, 1, 2, 2), dtype=jnp.float32)

    out = jax.block_until_ready(gated_pool2d(x, mask))
    ref = gated_pool2d_ref(x, mask)

    assert out.shape == (2, 4, 8, 128), out.shape
    assert jnp.allclose(out, ref, atol=1e-5, rtol=1e-5), (
        float(jnp.max(jnp.abs(out - ref))))

    print("KERNEL_OK")
</pallas_src>

<mosaic_0001>
module attributes {stable_mosaic.version = 11 : i64} {
  func.func @_gated_pool_kernel(%arg0: i32, %arg1: memref<4xf32, #tpu.memory_space<smem>>, %arg2: memref<8x512xf32, #tpu.memory_space<vmem>>, %arg3: memref<8x128xf32, #tpu.memory_space<vmem>>) attributes {dimension_semantics = [#tpu.dimension_semantics<parallel>], iteration_bounds = array<i64: 8>, scalar_prefetch = 1 : i64, scratch_operands = 0 : i64, tpu.core_type = #tpu.core_type<tc>, window_params = [{transform_indices = @transform_0, window_bounds = array<i64: 8, 512>}, {transform_indices = @transform_1, window_bounds = array<i64: 8, 128>}]} {
    %c0 = arith.constant 0 : index
    %0 = memref.load %arg1[%c0] : memref<4xf32, #tpu.memory_space<smem>>
    %c1 = arith.constant 1 : index
    %1 = memref.load %arg1[%c1] : memref<4xf32, #tpu.memory_space<smem>>
    %c2 = arith.constant 2 : index
    %2 = memref.load %arg1[%c2] : memref<4xf32, #tpu.memory_space<smem>>
    %c3 = arith.constant 3 : index
    %3 = memref.load %arg1[%c3] : memref<4xf32, #tpu.memory_space<smem>>
    %c0_0 = arith.constant 0 : index
    %c0_1 = arith.constant 0 : index
    %4 = vector.load %arg2[%c0_0, %c0_1] : memref<8x512xf32, #tpu.memory_space<vmem>>, vector<8x256xf32>
    %c0_2 = arith.constant 0 : index
    %c256 = arith.constant 256 : index
    %5 = vector.load %arg2[%c0_2, %c256] : memref<8x512xf32, #tpu.memory_space<vmem>>, vector<8x256xf32>
    %c255_i32 = arith.constant 255 : i32
    %6 = tpu.dynamic_rotate %4 by %c255_i32 dim 1 : vector<8x256xf32>, i32 -> vector<8x256xf32>
    %c255_i32_3 = arith.constant 255 : i32
    %7 = tpu.dynamic_rotate %5 by %c255_i32_3 dim 1 : vector<8x256xf32>, i32 -> vector<8x256xf32>
    %8 = arith.addf %4, %6 : vector<8x256xf32>
    %9 = arith.addf %5, %7 : vector<8x256xf32>
    %10 = arith.addf %8, %9 : vector<8x256xf32>
    %cst = arith.constant 2.500000e-01 : f32
    %11 = vector.broadcast %cst : f32 to vector<8x256xf32>
    %12 = arith.mulf %10, %11 : vector<8x256xf32>
    %13 = vector.broadcast %0 : f32 to vector<8x256xf32>
    %14 = arith.mulf %13, %4 : vector<8x256xf32>
    %15 = vector.broadcast %1 : f32 to vector<8x256xf32>
    %16 = arith.mulf %15, %6 : vector<8x256xf32>
    %17 = arith.addf %14, %16 : vector<8x256xf32>
    %18 = vector.broadcast %2 : f32 to vector<8x256xf32>
    %19 = arith.mulf %18, %5 : vector<8x256xf32>
    %20 = arith.addf %17, %19 : vector<8x256xf32>
    %21 = vector.broadcast %3 : f32 to vector<8x256xf32>
    %22 = arith.mulf %21, %7 : vector<8x256xf32>
    %23 = arith.addf %20, %22 : vector<8x256xf32>
    %24 = arith.negf %23 : vector<8x256xf32>
    %25 = math.exp %24 : vector<8x256xf32>
    %cst_4 = arith.constant 1.000000e+00 : f32
    %26 = vector.broadcast %cst_4 : f32 to vector<8x256xf32>
    %27 = arith.addf %26, %25 : vector<8x256xf32>
    %28 = arith.divf %26, %27 : vector<8x256xf32>
    %29 = arith.maximumf %4, %6 : vector<8x256xf32>
    %30 = arith.maximumf %5, %7 : vector<8x256xf32>
    %31 = arith.maximumf %29, %30 : vector<8x256xf32>
    %32 = arith.subf %31, %12 : vector<8x256xf32>
    %33 = arith.mulf %28, %32 : vector<8x256xf32>
    %34 = arith.addf %12, %33 : vector<8x256xf32>
    %35 = tpu.iota {dimensions = array<i32: 1>} : vector<1x256xi32>
    %c1_i32 = arith.constant 1 : i32
    %36 = vector.broadcast %c1_i32 : i32 to vector<1x256xi32>
    %37 = arith.addi %35, %36 : vector<1x256xi32>
    %c1_i32_5 = arith.constant 1 : i32
    %38 = vector.broadcast %c1_i32_5 : i32 to vector<1x256xi32>
    %39 = arith.shrsi %37, %38 : vector<1x256xi32>
    %c1_i32_6 = arith.constant 1 : i32
    %40 = vector.broadcast %c1_i32_6 : i32 to vector<1x256xi32>
    %41 = arith.andi %39, %40 : vector<1x256xi32>
    %c1_i32_7 = arith.constant 1 : i32
    %42 = vector.broadcast %c1_i32_7 : i32 to vector<1x256xi32>
    %43 = arith.cmpi eq, %41, %42 : vector<1x256xi32>
    %c255_i32_8 = arith.constant 255 : i32
    %44 = tpu.dynamic_rotate %34 by %c255_i32_8 dim 1 : vector<8x256xf32>, i32 -> vector<8x256xf32>
    %45 = vector.shape_cast %43 : vector<1x256xi1> to vector<1x256xi1>
    %46 = vector.broadcast %45 : vector<1x256xi1> to vector<8x256xi1>
    %47 = arith.select %46, %44, %34 : vector<8x256xi1>, vector<8x256xf32>
    %c2_i32 = arith.constant 2 : i32
    %48 = vector.broadcast %c2_i32 : i32 to vector<1x256xi32>
    %49 = arith.addi %35, %48 : vector<1x256xi32>
    %c2_i32_9 = arith.constant 2 : i32
    %50 = vector.broadcast %c2_i32_9 : i32 to vector<1x256xi32>
    %51 = arith.shrsi %49, %50 : vector<1x256xi32>
    %c1_i32_10 = arith.constant 1 : i32
    %52 = vector.broadcast %c1_i32_10 : i32 to vector<1x256xi32>
    %53 = arith.andi %51, %52 : vector<1x256xi32>
    %c1_i32_11 = arith.constant 1 : i32
    %54 = vector.broadcast %c1_i32_11 : i32 to vector<1x256xi32>
    %55 = arith.cmpi eq, %53, %54 : vector<1x256xi32>
    %c254_i32 = arith.constant 254 : i32
    %56 = tpu.dynamic_rotate %47 by %c254_i32 dim 1 : vector<8x256xf32>, i32 -> vector<8x256xf32>
    %57 = vector.shape_cast %55 : vector<1x256xi1> to vector<1x256xi1>
    %58 = vector.broadcast %57 : vector<1x256xi1> to vector<8x256xi1>
    %59 = arith.select %58, %56, %47 : vector<8x256xi1>, vector<8x256xf32>
    %c4_i32 = arith.constant 4 : i32
    %60 = vector.broadcast %c4_i32 : i32 to vector<1x256xi32>
    %61 = arith.addi %35, %60 : vector<1x256xi32>
    %c3_i32 = arith.constant 3 : i32
    %62 = vector.broadcast %c3_i32 : i32 to vector<1x256xi32>
    %63 = arith.shrsi %61, %62 : vector<1x256xi32>
    %c1_i32_12 = arith.constant 1 : i32
    %64 = vector.broadcast %c1_i32_12 : i32 to vector<1x256xi32>
    %65 = arith.andi %63, %64 : vector<1x256xi32>
    %c1_i32_13 = arith.constant 1 : i32
    %66 = vector.broadcast %c1_i32_13 : i32 to vector<1x256xi32>
    %67 = arith.cmpi eq, %65, %66 : vector<1x256xi32>
    %c252_i32 = arith.constant 252 : i32
    %68 = tpu.dynamic_rotate %59 by %c252_i32 dim 1 : vector<8x256xf32>, i32 -> vector<8x256xf32>
    %69 = vector.shape_cast %67 : vector<1x256xi1> to vector<1x256xi1>
    %70 = vector.broadcast %69 : vector<1x256xi1> to vector<8x256xi1>
    %71 = arith.select %70, %68, %59 : vector<8x256xi1>, vector<8x256xf32>
    %c8_i32 = arith.constant 8 : i32
    %72 = vector.broadcast %c8_i32 : i32 to vector<1x256xi32>
    %73 = arith.addi %35, %72 : vector<1x256xi32>
    %c4_i32_14 = arith.constant 4 : i32
    %74 = vector.broadcast %c4_i32_14 : i32 to vector<1x256xi32>
    %75 = arith.shrsi %73, %74 : vector<1x256xi32>
    %c1_i32_15 = arith.constant 1 : i32
    %76 = vector.broadcast %c1_i32_15 : i32 to vector<1x256xi32>
    %77 = arith.andi %75, %76 : vector<1x256xi32>
    %c1_i32_16 = arith.constant 1 : i32
    %78 = vector.broadcast %c1_i32_16 : i32 to vector<1x256xi32>
    %79 = arith.cmpi eq, %77, %78 : vector<1x256xi32>
    %c248_i32 = arith.constant 248 : i32
    %80 = tpu.dynamic_rotate %71 by %c248_i32 dim 1 : vector<8x256xf32>, i32 -> vector<8x256xf32>
    %81 = vector.shape_cast %79 : vector<1x256xi1> to vector<1x256xi1>
    %82 = vector.broadcast %81 : vector<1x256xi1> to vector<8x256xi1>
    %83 = arith.select %82, %80, %71 : vector<8x256xi1>, vector<8x256xf32>
    %c16_i32 = arith.constant 16 : i32
    %84 = vector.broadcast %c16_i32 : i32 to vector<1x256xi32>
    %85 = arith.addi %35, %84 : vector<1x256xi32>
    %c5_i32 = arith.constant 5 : i32
    %86 = vector.broadcast %c5_i32 : i32 to vector<1x256xi32>
    %87 = arith.shrsi %85, %86 : vector<1x256xi32>
    %c1_i32_17 = arith.constant 1 : i32
    %88 = vector.broadcast %c1_i32_17 : i32 to vector<1x256xi32>
    %89 = arith.andi %87, %88 : vector<1x256xi32>
    %c1_i32_18 = arith.constant 1 : i32
    %90 = vector.broadcast %c1_i32_18 : i32 to vector<1x256xi32>
    %91 = arith.cmpi eq, %89, %90 : vector<1x256xi32>
    %c240_i32 = arith.constant 240 : i32
    %92 = tpu.dynamic_rotate %83 by %c240_i32 dim 1 : vector<8x256xf32>, i32 -> vector<8x256xf32>
    %93 = vector.shape_cast %91 : vector<1x256xi1> to vector<1x256xi1>
    %94 = vector.broadcast %93 : vector<1x256xi1> to vector<8x256xi1>
    %95 = arith.select %94, %92, %83 : vector<8x256xi1>, vector<8x256xf32>
    %c32_i32 = arith.constant 32 : i32
    %96 = vector.broadcast %c32_i32 : i32 to vector<1x256xi32>
    %97 = arith.addi %35, %96 : vector<1x256xi32>
    %c6_i32 = arith.constant 6 : i32
    %98 = vector.broadcast %c6_i32 : i32 to vector<1x256xi32>
    %99 = arith.shrsi %97, %98 : vector<1x256xi32>
    %c1_i32_19 = arith.constant 1 : i32
    %100 = vector.broadcast %c1_i32_19 : i32 to vector<1x256xi32>
    %101 = arith.andi %99, %100 : vector<1x256xi32>
    %c1_i32_20 = arith.constant 1 : i32
    %102 = vector.broadcast %c1_i32_20 : i32 to vector<1x256xi32>
    %103 = arith.cmpi eq, %101, %102 : vector<1x256xi32>
    %c224_i32 = arith.constant 224 : i32
    %104 = tpu.dynamic_rotate %95 by %c224_i32 dim 1 : vector<8x256xf32>, i32 -> vector<8x256xf32>
    %105 = vector.shape_cast %103 : vector<1x256xi1> to vector<1x256xi1>
    %106 = vector.broadcast %105 : vector<1x256xi1> to vector<8x256xi1>
    %107 = arith.select %106, %104, %95 : vector<8x256xi1>, vector<8x256xf32>
    %c64_i32 = arith.constant 64 : i32
    %108 = vector.broadcast %c64_i32 : i32 to vector<1x256xi32>
    %109 = arith.addi %35, %108 : vector<1x256xi32>
    %c7_i32 = arith.constant 7 : i32
    %110 = vector.broadcast %c7_i32 : i32 to vector<1x256xi32>
    %111 = arith.shrsi %109, %110 : vector<1x256xi32>
    %c1_i32_21 = arith.constant 1 : i32
    %112 = vector.broadcast %c1_i32_21 : i32 to vector<1x256xi32>
    %113 = arith.andi %111, %112 : vector<1x256xi32>
    %c1_i32_22 = arith.constant 1 : i32
    %114 = vector.broadcast %c1_i32_22 : i32 to vector<1x256xi32>
    %115 = arith.cmpi eq, %113, %114 : vector<1x256xi32>
    %c192_i32 = arith.constant 192 : i32
    %116 = tpu.dynamic_rotate %107 by %c192_i32 dim 1 : vector<8x256xf32>, i32 -> vector<8x256xf32>
    %117 = vector.shape_cast %115 : vector<1x256xi1> to vector<1x256xi1>
    %118 = vector.broadcast %117 : vector<1x256xi1> to vector<8x256xi1>
    %119 = arith.select %118, %116, %107 : vector<8x256xi1>, vector<8x256xf32>
    %120 = vector.extract_strided_slice %119 {offsets = [0, 0], sizes = [8, 128], strides = [1, 1]} : vector<8x256xf32> to vector<8x128xf32>
    %c0_23 = arith.constant 0 : index
    %c0_24 = arith.constant 0 : index
    %121 = vector.load %arg3[%c0_23, %c0_24] : memref<8x128xf32, #tpu.memory_space<vmem>>, vector<8x128xf32>
    tpu.vector_store %arg3[%c0_23, %c0_24], %120 {strides = array<i32>} : memref<8x128xf32, #tpu.memory_space<vmem>>, vector<8x128xf32>,
    return
  }
  func.func @transform_0(%arg0: i32, %arg1: memref<4xf32, #tpu.memory_space<smem>>) -> (i32, i32) {
    %c0_i32 = arith.constant 0 : i32
    %c0_i32_0 = arith.constant 0 : i32
    return %arg0, %c0_i32 : i32, i32
  }
  func.func @transform_1(%arg0: i32, %arg1: memref<4xf32, #tpu.memory_space<smem>>) -> (i32, i32) {
    %c0_i32 = arith.constant 0 : i32
    %c0_i32_0 = arith.constant 0 : i32
    return %arg0, %c0_i32 : i32, i32
  }
}

</mosaic_0001>

<bundles_post_ra>
// kernel: tpu_custom_call.1
= control target key start
LH: loop header
LB: loop body
LE: loop exit
PB: predicated region body
PF: predicated region fallthrough
CT: control target
= control target key end

     0   :  { %s878_s0 = inlined_call_operand.hbm [shape: f32[4], index: 0, kind: input, shape index: {}]   ;;  %s879_s1 = inlined_call_operand.hbm [shape: f32[64,512], index: 1, kind: input, shape index: {}]   ;;  %s880_s2 = inlined_call_operand.hbm [shape: f32[64,128], index: 2, kind: output, shape index: {}]  }
   0x1   :  { %s516_s11 = scalar_lea.hbm %s878_s0, 16 }
   0x2   :  { %p517_p0 = scmp.ne.s32.totalorder %s878_s0, %s516_s11  ;;  %p520_p1 = scmp.lt.u32.totalorder %s516_s11, %s878_s0 }
   0x4   :  { %p522_p2 = pnand %p520_p1, %p517_p0 }
   0x6   :  { %525 = shalt.err (!%p522_p2)  }
   0x7   :  { %s626_s16 = smov [#allocation3]  }
   0x8   :  { %8 = dma.hbm_to_smem %s878_s0, 16, %s626_s16, [#allocation2] }
   0x9   :  { %600 = dma.done.wait [#allocation2], 16 }
   0xa   :  { %601 = vsyncadd [#allocation2], 4294967280 }
   0xb   :  { %10 = sfence }
   0xc   :  { %11 = vsyncpa [#allocation5], 0 }
   0xd   :  { %13 = vsyncpa [#allocation5 + $0x1], 0 }
   0xe   :  { %14 = vsyncpa [#allocation6], 0 }
   0xf   :  { %16 = vsyncpa [#allocation6 + $0x1], 0  ;;  %s663_s19 = smov 0   ;;  %s665_s20 = smov 0  }
  0x10   :  { %s667_s21 = smov 0   ;;  %s669_s22 = smov 0  }
  0x11 LB: > { %s684_s0 = sadd.s32 4294967295, %s624_s22   ;;  %s435_s23 = sadd.s32 4294967294, %s624_s22   ;;  %s624_s22 = sphi %s669_s22, %s894_s22   ;;  %s620_s21 = sphi %s667_s21, %s893_s21   ;;  %s616_s20 = sphi %s665_s20, %s892_s20   ;;  %s612_s19 = sphi %s663_s19, %s891_s19  }
  0x12   : > { %s688_s24 = sadd.s32 1, %s624_s22   ;;  %s29_s25 = sadd.s32 1, %s620_s21 }
  0x13   : > { %s26_s26 = ssub.s32 %s624_s22, %s688_s24  ;;  %p36_p3 = scmp.ne.s32.totalorder %s620_s21, %s616_s20 }
  0x14   : > { %p27_p4 = scmp.eq.s32.totalorder %s26_s26, 0  ;;  %p37_p5 = scmp.eq.s32.totalorder %s624_s22, 0 }
  0x15   : > { %p42_p6 = scmp.ne.s32.totalorder %s616_s20, %s612_s19  ;;  %p43_p7 = scmp.eq.s32.totalorder %s684_s0, 0 }
  0x16   : > { %s700_s27 = scalar_select %p27_p4, %s620_s21, %s29_s25  }
  0x17   : > { %p702_p8 = por %p37_p5, %p36_p3  ;;  %p706_p9 = por %p43_p7, %p42_p6 }
  0x18   : > { %p66_p10 = scmp.eq.s32.totalorder %s684_s0, 7  ;;  %p72_p11 = scmp.eq.s32.totalorder %s435_s23, 7 }
  0x19   : > { %p466_p12 = scmp.lt.s32.totalorder %s624_s22, 8  ;;  %s92_s4 = sand.u32 1, %s620_s21  }
  0x1a   : > { %p712_p13 = por %p66_p10, %p36_p3  ;;  %p716_p0 = por %p72_p11, %p42_p6 }
  0x1b   : > { %s453_s5 = sshll.u32 %s624_s22, 9  ;;  %s438_s6 = sshll.u32 %s92_s4, 5 }
  0x1c   : > { %s884_s30 = scalar_select %p712_p13, 1, 0 }
  0x1d   : > { %s885_s3 = scalar_select %p716_p0, 1, 0 }
  0x1e   : > { %s725_s9 = scalar_lea.hbm %s879_s1, %s453_s5  ;;  %s96_s10 = scalar_lea.vmem [#allocation4], %s438_s6 }
  0x1f   : > { %s104_s11 = sshll.u32 %s96_s10, 4  ;;  %p729_p1 = pnand %p466_p12, %p702_p8  ;;  %s733_s11 = int_to_ptr.vmem [resolvable:$true] %s104_s11 }
  0x20   : > { %s93_s13 = scalar_lea.sflag [#allocation5], %s92_s4  ;;  %s526_s14 = scalar_lea.hbm %s725_s9, 512 }
  0x21   : > { %p527_p4 = scmp.ne.s32.totalorder %s725_s9, %s526_s14  ;;  %p528_p5 = pneg %p729_p1 }
  0x22   : > { %s531_s17 = scalar_lea.hbm %s879_s1, 4096  ;;  %p532_p8 = scmp.lt.u32.totalorder %s725_s9, %s879_s1 }
  0x23   : > { %p529_p6 = pnand %p528_p5, %p527_p4  ;;  %p533_p10 = scmp.lt.u32.totalorder %s531_s17, %s526_s14 }
  0x24   : > { %p535_p12 = scmp.lt.u32.totalorder %s526_s14, %s725_s9 }
  0x25   : > { %p530_p7 = pneg %p529_p6  ;;  %p534_p11 = por %p533_p10, %p532_p8 }
  0x27   : > { %p536_p2 = por %p535_p12, %p534_p11 }
  0x29   : > { %p537_p3 = pnand %p536_p2, %p530_p7 }
  0x2b   : > { %540 = shalt.err (!%p537_p3)
}
  0x2c   : > { %s541_s25 = scalar_lea.vmem %s733_s11, 512  ;;  %s627_s26 = smov [#allocation4]  }
  0x2d   : > { %p542_p4 = scmp.ne.s32.totalorder %s733_s11, %s541_s25  ;;  %s546_s28 = sshll.u32 %s627_s26, 4  ;;  %s547_s28 = int_to_ptr.vmem [resolvable:$false] %s546_s28 }
  0x2e   : > { %s548_s4 = scalar_lea.vmem %s547_s28, 1024  ;;  %p549_p13 = scmp.lt.s32.totalorder %s733_s11, %s547_s28 }
  0x2f   : > { %p544_p6 = pnand %p542_p4, %p528_p5  ;;  %p550_p8 = scmp.lt.s32.totalorder %s548_s4, %s541_s25 }
  0x31   : > { %p545_p0 = pneg %p544_p6  ;;  %p551_p10 = por %p550_p8, %p549_p13 }
  0x33   : > { %p552_p11 = pnand %p551_p10, %p545_p0 }
  0x35   : > { %555 = shalt.err (!%p552_p11)
}
  0x36   : > { %461 = dma.hbm_to_vmem [thread:$0]  (!%p729_p1), %s725_s9, 512, %s733_s11, %s93_s13  }
  0x37   : > { %p887_p2 = scmp.lt.s32.totalorder %s624_s22, 9  ;;  %p888_p3 = scmp.ge.s32.totalorder %s624_s22, 1 }
  0x39   : > { %p110_p5 = pnand %p888_p3, %p887_p2 }
  0x3a   : > { %s767_s5 = sand.u32 (!%p110_p5), 1, %s616_s20  }
  0x3b   : > { %113 = sbr.rel (%p110_p5) target bundleno = 1060 (0x424), region = 24  ;;  %s442_s6 = sshll.u32 (!%p110_p5), %s767_s5, 5 }
  0x3c   : > { %s116_s7 = scalar_lea.sflag (!%p110_p5), [#allocation5], %s767_s5  ;;  %s119_s8 = scalar_lea.vmem (!%p110_p5), [#allocation4], %s442_s6 }
  0x42   : > { %603 = dma.done.wait (%p706_p9), %s116_s7, 512  }
  0x43   : > { %605 = vsyncadd (%p706_p9), %s116_s7, 4294966784  ;;  %v775_v0 = vld [vmem:[%s119_s8 + $0x10] sm:$0xff]  ;;  %v777_v1 = vld [vmem:[%s119_s8] sm:$0xff]  ;;  %s628_s9 = smov 127   ;;  %v150_v4 = vlaneseq  ;;  %s138_s29 = sld [smem:[#allocation3]] }
  0x44   : > { %155 = vrot.lane.b32.xlu1 %v775_v0, %s628_s9  ;;  %146 = vrot.lane.b32.xlu0 %v777_v1, %s628_s9  ;;  %v145_v2 = vld [vmem:[%s119_s8 + $0x18] sm:$0xff]  ;;  %v143_v3 = vld [vmem:[%s119_s8 + $0x8] sm:$0xff]  ;;  %s445_s10 = sld [smem:[#allocation3 + $0x2]]  ;;  %s444_s11 = sld [smem:[#allocation3 + $0x1]] }
  0x45   : > { %v785_v5 = vand.u32 127, %v150_v4  ;;  %s446_s12 = sld [smem:[#allocation3 + $0x3]]  ;;  %s629_s13 = smov 126  }
  0x46   : > { %s630_s14 = smov 124   ;;  %s631_s15 = smov 120  }
  0x47   : > { %vm152_vm0 = vcmp.lt.s32.totalorder %v785_v5, 127  ;;  %v805_v60 = vadd.s32 128, %v785_v5  ;;  %v212_v62 = vadd.s32 1, %v785_v5  ;;  %vm244_vm3 = vcmp.lt.s32.totalorder %v785_v5, 126  ;;  %s632_s16 = smov 112   ;;  %s633_s17 = smov 96  }
  0x48   : > { %157 = vrot.lane.b32.xlu1 %v145_v2, %s628_s9  ;;  %148 = vrot.lane.b32.xlu0 %v143_v3, %s628_s9  ;;  %vm265_vm6 = vcmp.lt.s32.totalorder %v785_v5, 124  ;;  %vm286_vm9 = vcmp.lt.s32.totalorder %v785_v5, 120  ;;  %vm307_vm12 = vcmp.lt.s32.totalorder %v785_v5, 112  ;;  %vm328_vm15 = vcmp.lt.s32.totalorder %v785_v5, 96  ;;  %s634_s18 = smov 64   ;;  %s443_s23 = sshll.u32 %s767_s5, 3 }
  0x49   : > { %v169_v8 = vstv %s138_s29  ;;  %v213_v61 = vadd.s32 1, %v805_v60  ;;  %s450_s25 = sshll.u32 %s684_s0, 7  ;;  %s137_s26 = scalar_lea.vmem [#allocation7], %s443_s23 }
  0x4a   : > { %v177_v10 = vstv %s445_s10  ;;  %v172_v13 = vstv %s444_s11  ;;  %v170_v14 = vmul.f32 %v169_v8, %v777_v1  ;;  %v171_v15 = vmul.f32 %v169_v8, %v143_v3  ;;  %s365_s28 = sshll.u32 %s137_s26, 4  ;;  %s835_s7 = scalar_lea.hbm %s880_s2, %s450_s25  ;;  %s837_s28 = int_to_ptr.vmem [resolvable:$true] %s365_s28 }
  0x4b   : > { %v178_v17 = vmul.f32 %v177_v10, %v775_v0  ;;  %v179_v18 = vmul.f32 %v177_v10, %v145_v2  ;;  %v182_v23 = vstv %s446_s12  ;;  %v215_v63 = vshra.s32 %v213_v61, 1  ;;  %s352_s8 = scalar_lea.sflag [#allocation6], %s767_s5  ;;  %s556_s0 = scalar_lea.vmem %s837_s28, 128 }
  0x4c   : > { %v233_v10 = vadd.s32 2, %v805_v60  ;;  %p557_p9 = scmp.ne.s32.totalorder %s837_s28, %s556_s0  ;;  %p889_p13 = scmp.ne.s32.totalorder %s884_s30, 0 }
  0x4e   : > { %p558_p0 = pnand %p557_p9, %p889_p13 }
  0x50   : > { %p559_p1 = pneg %p558_p0 }
  0xb6   : > { %v156_v6 = vpop.permute.xlu1 %155  ;;  %v147_v7 = vpop.permute.xlu0 %146 }
  0xba   : > { %v149_v9 = vpop.permute.xlu0 %148  ;;  %v158_v16 = vpop.permute.xlu1 %157 }
  0xbb   : > { %v153_v11 = vsel %vm152_vm0, %v147_v7, %v149_v9  ;;  %v154_v12 = vsel %vm152_vm0, %v149_v9, %v147_v7  ;;  %v159_v21 = vsel %vm152_vm0, %v156_v6, %v158_v16  ;;  %v160_v22 = vsel %vm152_vm0, %v158_v16, %v156_v6 }
  0xbc   : > { %v173_v19 = vmul.f32 %v172_v13, %v153_v11  ;;  %v174_v20 = vmul.f32 %v172_v13, %v154_v12  ;;  %v183_v26 = vmul.f32 %v182_v23, %v159_v21  ;;  %v184_v27 = vmul.f32 %v182_v23, %v160_v22 }
  0xbd   : > { %v163_v35 = vadd.f32 %v159_v21, %v775_v0  ;;  %v161_v36 = vadd.f32 %v153_v11, %v777_v1  ;;  %v164_v38 = vadd.f32 %v160_v22, %v145_v2  ;;  %v162_v39 = vadd.f32 %v154_v12, %v143_v3 }
  0xbe   : > { %v175_v24 = vadd.f32 %v173_v19, %v170_v14  ;;  %v176_v25 = vadd.f32 %v174_v20, %v171_v15  ;;  %v201_v44 = vmax.f32 %v775_v0, %v159_v21  ;;  %v199_v45 = vmax.f32 %v777_v1, %v153_v11 }
  0xbf   : > { %v165_v42 = vadd.f32 %v163_v35, %v161_v36  ;;  %v166_v43 = vadd.f32 %v164_v38, %v162_v39  ;;  %v202_v46 = vmax.f32 %v145_v2, %v160_v22  ;;  %v200_v47 = vmax.f32 %v143_v3, %v154_v12 }
  0xc0   : > { %v180_v28 = vadd.f32 %v178_v17, %v175_v24  ;;  %v181_v29 = vadd.f32 %v179_v18, %v176_v25  ;;  %v203_v50 = vmax.f32 %v199_v45, %v201_v44  ;;  %v214_v0 = vshra.s32 %v212_v62, 1 }
  0xc1   : > { %v167_v48 = vmul.f32 0.25, %v165_v42  ;;  %v168_v49 = vmul.f32 0.25, %v166_v43  ;;  %v204_v51 = vmax.f32 %v200_v47, %v202_v46  ;;  %v217_v1 = vand.u32 1, %v215_v63 }
  0xc2   : > { %v185_v30 = vadd.f32 %v183_v26, %v180_v28  ;;  %v186_v31 = vadd.f32 %v184_v27, %v181_v29  ;;  %v216_v2 = vand.u32 1, %v214_v0  ;;  %v232_v11 = vadd.s32 2, %v785_v5 }
  0xc3   : > { %v205_v52 = vsub.f32 %v203_v50, %v167_v48  ;;  %v206_v54 = vsub.f32 %v204_v51, %v168_v49  ;;  %vm219_vm1 = vcmp.eq.s32.totalorder %v217_v1, 1  ;;  %v235_v12 = vshra.s32 %v233_v10, 2 }
  0xc4   : > { %v447_v32 = vmul.f32 -1.442695, %v185_v30  ;;  %v448_v33 = vmul.f32 -1.442695, %v186_v31  ;;  %vm218_vm2 = vcmp.eq.s32.totalorder %v216_v2, 1  ;;  %v234_v13 = vshra.s32 %v232_v11, 2 }
  0xc5   : > { %v237_v14 = vand.u32 1, %v235_v12  ;;  %v254_v22 = vadd.s32 4, %v805_v60  ;;  %v253_v23 = vadd.s32 4, %v785_v5  ;;  %v274_v35 = vadd.s32 8, %v785_v5 }
  0xc6   : > { %508 = vpow2.f32 %v447_v32  ;;  %v236_v15 = vand.u32 1, %v234_v13  ;;  %v296_v46 = vadd.s32 16, %v805_v60  ;;  %v295_v47 = vadd.s32 16, %v785_v5 }
  0xc7   : > { %510 = vpow2.f32 %v448_v33  ;;  %vm239_vm4 = vcmp.eq.s32.totalorder %v237_v14, 1  ;;  %v256_v24 = vshra.s32 %v254_v22, 3  ;;  %v255_v25 = vshra.s32 %v253_v23, 3 }
  0xc8   : > { %vm238_vm5 = vcmp.eq.s32.totalorder %v236_v15, 1 }
  0xc9   : > { %v258_v26 = vand.u32 1, %v256_v24  ;;  %v257_v27 = vand.u32 1, %v255_v25 }
  0xcb   : > { %vm260_vm7 = vcmp.eq.s32.totalorder %v258_v26, 1  ;;  %vm259_vm8 = vcmp.eq.s32.totalorder %v257_v27, 1 }
  0xd0   : > { %v509_v34 = vpop.eup %508 }
  0xd1   : > { %v511_v37 = vpop.eup %510  ;;  %v193_v40 = vadd.f32 1.0, %v509_v34  ;;  %v275_v34 = vadd.s32 8, %v805_v60 }
  0xd2   : > { %v194_v41 = vadd.f32 1.0, %v511_v37  ;;  %v276_v37 = vshra.s32 %v274_v35, 4 }
  0xd3   : > { %512 = vrcp.f32 %v193_v40  ;;  %v277_v36 = vshra.s32 %v275_v34, 4 }
  0xd4   : > { %514 = vrcp.f32 %v194_v41  ;;  %v278_v39 = vand.u32 1, %v276_v37 }
  0xd5   : > { %v279_v38 = vand.u32 1, %v277_v36 }
  0xd6   : > { %vm280_vm11 = vcmp.eq.s32.totalorder %v278_v39, 1 }
  0xd7   : > { %vm281_vm10 = vcmp.eq.s32.totalorder %v279_v38, 1 }
  0xdd   : > { %v513_v53 = vpop.eup %512 }
  0xde   : > { %v515_v55 = vpop.eup %514  ;;  %v207_v56 = vmul.f32 %v513_v53, %v205_v52 }
  0xdf   : > { %v208_v57 = vmul.f32 %v515_v55, %v206_v54 }
  0xe0   : > { %v209_v58 = vadd.f32 %v207_v56, %v167_v48  ;;  %v298_v48 = vshra.s32 %v296_v46, 5 }
  0xe1   : > { %v210_v59 = vadd.f32 %v208_v57, %v168_v49  ;;  %v297_v49 = vshra.s32 %v295_v47, 5 }
  0xe2   : > { %220 = vrot.lane.b32.xlu0 %v209_v58, %s628_s9  ;;  %v300_v50 = vand.u32 1, %v298_v48 }
  0xe3   : > { %222 = vrot.lane.b32.xlu1 %v210_v59, %s628_s9  ;;  %v299_v51 = vand.u32 1, %v297_v49  ;;  %s635_s9 = smov [#allocation7]  }
  0xe4   : > { %vm302_vm13 = vcmp.eq.s32.totalorder %v300_v50, 1  ;;  %s560_s29 = sshll.u32 %s635_s9, 4  ;;  %s561_s29 = int_to_ptr.vmem [resolvable:$false] %s560_s29 }
  0xe5   : > { %vm301_vm14 = vcmp.eq.s32.totalorder %v299_v51, 1  ;;  %s562_s10 = scalar_lea.vmem %s561_s29, 256  ;;  %p563_p7 = scmp.lt.s32.totalorder %s837_s28, %s561_s29 }
  0xe6   : > { %p564_p12 = scmp.lt.s32.totalorder %s562_s10, %s556_s0 }
  0xe8   : > { %p565_p4 = por %p564_p12, %p563_p7 }
  0xea   : > { %p566_p6 = pnand %p565_p4, %p559_p1 }
 0x154   : > { %v221_v3 = vpop.permute.xlu0 %220 }
 0x155   : > { %v223_v4 = vpop.permute.xlu1 %222 }
 0x156   : > { %v224_v6 = vsel %vm152_vm0, %v221_v3, %v223_v4  ;;  %v225_v7 = vsel %vm152_vm0, %v223_v4, %v221_v3 }
 0x157   : > { %v231_v8 = vsel %vm219_vm1, %v225_v7, %v210_v59  ;;  %v230_v9 = vsel %vm218_vm2, %v224_v6, %v209_v58  ;;  %v317_v58 = vadd.s32 32, %v805_v60  ;;  %v316_v59 = vadd.s32 32, %v785_v5 }
 0x158   : > { %242 = vrot.lane.b32.xlu1 %v231_v8, %s629_s13  ;;  %240 = vrot.lane.b32.xlu0 %v230_v9, %s629_s13  ;;  %v337_v60 = vadd.s32 64, %v785_v5  ;;  %vm345_vm2 = vcmp.lt.s32.totalorder %v785_v5, 64 }
 0x159   : > { %v319_v61 = vshra.s32 %v317_v58, 6  ;;  %v318_v62 = vshra.s32 %v316_v59, 6 }
 0x15b   : > { %v321_v63 = vand.u32 1, %v319_v61  ;;  %v320_v0 = vand.u32 1, %v318_v62 }
 0x15d   : > { %vm323_vm0 = vcmp.eq.s32.totalorder %v321_v63, 1  ;;  %vm322_vm1 = vcmp.eq.s32.totalorder %v320_v0, 1 }
 0x1ca   : > { %v243_v16 = vpop.permute.xlu1 %242  ;;  %v241_v17 = vpop.permute.xlu0 %240 }
 0x1cb   : > { %v245_v18 = vsel %vm244_vm3, %v241_v17, %v243_v16  ;;  %v246_v19 = vsel %vm244_vm3, %v243_v16, %v241_v17 }
 0x1cc   : > { %v252_v20 = vsel %vm239_vm4, %v246_v19, %v231_v8  ;;  %v251_v21 = vsel %vm238_vm5, %v245_v18, %v230_v9  ;;  %v338_v8 = vshra.s32 %v337_v60, 7 }
 0x1cd   : > { %263 = vrot.lane.b32.xlu1 %v252_v20, %s630_s14  ;;  %261 = vrot.lane.b32.xlu0 %v251_v21, %s630_s14 }
 0x1ce   : > { %v339_v9 = vand.u32 1, %v338_v8 }
 0x1d0   : > { %vm340_vm3 = vcmp.eq.s32.totalorder %v339_v9, 1 }
 0x23f   : > { %v264_v28 = vpop.permute.xlu1 %263  ;;  %v262_v29 = vpop.permute.xlu0 %261 }
 0x240   : > { %v266_v30 = vsel %vm265_vm6, %v262_v29, %v264_v28  ;;  %v267_v31 = vsel %vm265_vm6, %v264_v28, %v262_v29 }
 0x241   : > { %v273_v32 = vsel %vm260_vm7, %v267_v31, %v252_v20  ;;  %v272_v33 = vsel %vm259_vm8, %v266_v30, %v251_v21 }
 0x242   : > { %284 = vrot.lane.b32.xlu1 %v273_v32, %s631_s15  ;;  %282 = vrot.lane.b32.xlu0 %v272_v33, %s631_s15 }
 0x2b4   : > { %v285_v40 = vpop.permute.xlu1 %284  ;;  %v283_v41 = vpop.permute.xlu0 %282 }
 0x2b5   : > { %v287_v42 = vsel %vm286_vm9, %v283_v41, %v285_v40  ;;  %v288_v43 = vsel %vm286_vm9, %v285_v40, %v283_v41 }
 0x2b6   : > { %v294_v44 = vsel %vm281_vm10, %v288_v43, %v273_v32  ;;  %v293_v45 = vsel %vm280_vm11, %v287_v42, %v272_v33 }
 0x2b7   : > { %305 = vrot.lane.b32.xlu1 %v294_v44, %s632_s16  ;;  %303 = vrot.lane.b32.xlu0 %v293_v45, %s632_s16 }
 0x329   : > { %v306_v52 = vpop.permute.xlu1 %305  ;;  %v304_v53 = vpop.permute.xlu0 %303 }
 0x32a   : > { %v308_v54 = vsel %vm307_vm12, %v304_v53, %v306_v52  ;;  %v309_v55 = vsel %vm307_vm12, %v306_v52, %v304_v53 }
 0x32b   : > { %v315_v56 = vsel %vm302_vm13, %v309_v55, %v294_v44  ;;  %v314_v57 = vsel %vm301_vm14, %v308_v54, %v293_v45 }
 0x32c   : > { %326 = vrot.lane.b32.xlu1 %v315_v56, %s633_s17  ;;  %324 = vrot.lane.b32.xlu0 %v314_v57, %s633_s17 }
 0x39e   : > { %v327_v1 = vpop.permute.xlu1 %326  ;;  %v325_v2 = vpop.permute.xlu0 %324 }
 0x39f   : > { %v329_v3 = vsel %vm328_vm15, %v325_v2, %v327_v1  ;;  %v330_v4 = vsel %vm328_vm15, %v327_v1, %v325_v2 }
 0x3a0   : > { %v336_v6 = vsel %vm323_vm0, %v330_v4, %v315_v56  ;;  %v335_v7 = vsel %vm322_vm1, %v329_v3, %v314_v57 }
 0x3a1   : > { %343 = vrot.lane.b32.xlu1 %v336_v6, %s634_s18  ;;  %341 = vrot.lane.b32.xlu0 %v335_v7, %s634_s18 }
 0x413   : > { %v344_v10 = vpop.permute.xlu1 %343  ;;  %v342_v11 = vpop.permute.xlu0 %341 }
 0x414   : > { %v346_v12 = vsel %vm345_vm2, %v342_v11, %v344_v10 }
 0x415   : > { %v349_v13 = vsel %vm340_vm3, %v346_v12, %v335_v7 }
 0x416   : > { %350 = vst [vmem:[%s137_s26] sm:$0xff] %v349_v13 }
 0x417   : > { %569 = shalt.err (!%p566_p6)
}
 0x418   : > { %s570_s5 = scalar_lea.hbm %s835_s7, 128  ;;  %s574_s13 = scalar_lea.hbm %s880_s2, 1024 }
 0x419   : > { %p571_p8 = scmp.ne.s32.totalorder %s835_s7, %s570_s5  ;;  %p575_p2 = scmp.lt.u32.totalorder %s835_s7, %s880_s2 }
 0x41a   : > { %p576_p3 = scmp.lt.u32.totalorder %s574_s13, %s570_s5  ;;  %p578_p9 = scmp.lt.u32.totalorder %s570_s5, %s835_s7 }
 0x41b   : > { %p572_p10 = pnand %p571_p8, %p889_p13 }
 0x41c   : > { %p577_p5 = por %p576_p3, %p575_p2 }
 0x41d   : > { %p573_p11 = pneg %p572_p10 }
 0x41e   : > { %p579_p0 = por %p578_p9, %p577_p5 }
 0x420   : > { %p580_p1 = pnand %p579_p0, %p573_p11 }
 0x422   : > { %583 = shalt.err (!%p580_p1)
}
 0x423   : > { %456 = dma.vmem_to_hbm [thread:$0]  (%p889_p13), %s837_s28, 128, %s835_s7, %s352_s8  }
 0x424 PF: > { %p467_p7 = scmp.ge.s32.totalorder %s624_s22, 2  ;;  %s377_s16 = sand.u32 1, %s612_s19  }
 0x425   : > { %p890_p12 = scmp.ne.s32.totalorder %s885_s3, 0  ;;  %s378_s17 = scalar_lea.sflag [#allocation6], %s377_s16 }
 0x427   : > { %p463_p4 = pnand %p467_p7, %p890_p12 }
 0x429   : > { %607 = dma.done.wait (!%p463_p4), %s378_s17, 128  }
 0x42a   : > { %609 = vsyncadd (!%p463_p4), %s378_s17, 4294967168  ;;  %p19_p6 = scmp.ge.s32.totalorder %s688_s24, 10   ;;  %s891_s19 = smov %s616_s20 }
 0x42b   : > { %s892_s20 = smov %s620_s21  ;;  %s893_s21 = smov %s700_s27 }
 0x42c   : > { %s894_s22 = smov %s688_s24  ;;  %21 = sbr.rel (!%p19_p6) target bundleno = 17 (0x11), region = 69 }
 0x433   :  { %383 = vsyncpa [#allocation5], 1 }
 0x434   :  { %385 = vsyncpa [#allocation5 + $0x1], 1 }
 0x435   :  { %386 = vsyncpa [#allocation6], 1 }
 0x436   :  { %388 = vsyncpa [#allocation6 + $0x1], 1 }

</bundles_post_ra>
